<compile_context>
chip_gen: v6e
topology: v6e:2x2x1
jax: 0.10.0
libtpu: 0.0.40
codegen_flags: <defaults>
</compile_context>

<pallas_src>
import functools

import jax
import jax.numpy as jnp
from jax.experimental import pallas as pl
from jax.experimental.pallas import tpu as pltpu


def _round_up(v, m):
    return (v + m - 1) // m * m


def _cdiv(a, b):
    return -(-a // b)


def _vmem_limit_bytes():
    """Per-generation scoped-VMEM budget: ~3/4 of physical, capped at 100 MiB.

    v5e/v6e: 128 MiB physical -> 96 MiB.   v7x: 64 MiB physical -> 48 MiB.
    """
    cap = None
    try:
        cap = getattr(pltpu.get_tpu_info(), "vmem_capacity_bytes", None)
    except Exception:
        cap = None
    if not cap:
        cap = 64 * 1024 * 1024            # conservative default (v7x per-TC)
    return int(min(cap * 3 // 4, 100 * 1024 * 1024))


def _choose_tile_hw(c, hw, itemsize, vmem_limit):
    hw128 = _round_up(hw, 128)
    # Per HW column: double-buffered in + out blocks in the input dtype, plus
    # up to two (C, TILE) f32 temporaries inside the kernel body.
    per_col_bytes = max(c, 1) * (4 * itemsize + 8)
    # Fast path: whole (C, HW) slab fits half the budget -> one tile, one-phase
    # kernel, x is read from HBM exactly once.
    if per_col_bytes * hw128 <= vmem_limit // 2:
        return hw128
    # Multi-tile: largest 128-aligned tile within ~1/3 of the budget, capped at
    # 2048 lanes; balance the tiles so the tail tile isn't tiny.
    budget = vmem_limit // 3
    max_tile = max(128, (budget // per_col_bytes) // 128 * 128)
    cap = int(min(2048, max_tile))
    nk = _cdiv(hw128, cap)
    return _round_up(_cdiv(hw128, nk), 128)


def _ca_single_kernel(beta_ref, x_ref, o_ref, *, hw, tile_hw):
    """One grid step per batch: gram -> softmax -> attn.T @ x -> residual."""
    x = x_ref[0]                                            # (C, T), input dtype
    xg = x
    if hw < tile_hw:                                        # static: ragged block
        col = jax.lax.broadcasted_iota(jnp.int32, x.shape, 1)
        xg = jnp.where(col < hw, x, jnp.zeros_like(x))
    gram = jax.lax.dot_general(xg, xg, (((1,), (1,)), ((), ())),
                               preferred_element_type=jnp.float32)   # (C, C) f32
    # gram is symmetric -> softmax(gram, -1).T == softmax(gram, 0): compute the
    # transposed attention directly.  Exact division (runs once per batch).
    m = jnp.max(gram, axis=0, keepdims=True)
    e = jnp.exp(gram - m)
    attn_t = (e / jnp.sum(e, axis=0, keepdims=True)).astype(x.dtype)
    out = jnp.dot(attn_t, x, preferred_element_type=jnp.float32)
    o_ref[0] = (beta_ref[0] * out + x.astype(jnp.float32)).astype(o_ref.dtype)


def _ca_two_phase_kernel(beta_ref, x_ref, o_ref, gram_ref, attn_t_ref,
                         *, hw, tile_hw):
    phase = pl.program_id(1)
    k = pl.program_id(2)
    nk = pl.num_programs(2)

    @pl.when(phase == 0)
    def _gram_pass():
        @pl.when(k == 0)
        def _init():
            gram_ref[...] = jnp.zeros_like(gram_ref)

        x = x_ref[0]                                        # (C, TILE_HW)
        if hw % tile_hw != 0:                               # static: ragged tail
            col = jax.lax.broadcasted_iota(jnp.int32, x.shape, 1) + k * tile_hw
            x = jnp.where(col < hw, x, jnp.zeros_like(x))
        # gram += x @ x.T  (f32 accumulation on the MXU)
        gram_ref[...] += jax.lax.dot_general(
            x, x, (((1,), (1,)), ((), ())),
            preferred_element_type=jnp.float32)

        @pl.when(k == nk - 1)
        def _softmax():
            g = gram_ref[...]                               # (C, C) f32, symmetric
            m = jnp.max(g, axis=0, keepdims=True)
            e = jnp.exp(g - m)
            attn_t_ref[...] = (e / jnp.sum(e, axis=0, keepdims=True)
                               ).astype(attn_t_ref.dtype)

    @pl.when(phase == 1)
    def _output_pass():
        x = x_ref[0]                                        # (C, TILE_HW)
        out = jnp.dot(attn_t_ref[...], x, preferred_element_type=jnp.float32)
        # Garbage lanes of a ragged tail tile only produce garbage in the same
        # output lanes, which the clipped writeback discards.
        o_ref[0] = (beta_ref[0] * out + x.astype(jnp.float32)).astype(o_ref.dtype)


def channel_attention(x, beta, tile_hw=None):
    """x: (B, C, H, W) array, beta: (1,) float32 parameter."""
    b, c, h, w = x.shape
    hw = h * w
    itemsize = jnp.dtype(x.dtype).itemsize
    vmem_limit = _vmem_limit_bytes()

    if tile_hw is None:
        tile_hw = _choose_tile_hw(c, hw, itemsize, vmem_limit)
    tile_hw = max(128, _round_up(int(tile_hw), 128))
    nk = _cdiv(hw, tile_hw)

    x_flat = x.reshape(b, c, hw)    # no pad: ragged tail tile is masked in-kernel

    if nk == 1:
        cost = pl.CostEstimate(
            flops=4 * b * c * c * hw,
            transcendentals=b * c * c,
            bytes_accessed=2 * b * c * hw * itemsize + 4 * b * c * c,
        )
        out_flat = pl.pallas_call(
            functools.partial(_ca_single_kernel, hw=hw, tile_hw=tile_hw),
            out_shape=jax.ShapeDtypeStruct((b, c, hw), x.dtype),
            grid=(b,),
            in_specs=[
                pl.BlockSpec(memory_space=pltpu.MemorySpace.SMEM),        # beta
                pl.BlockSpec((1, c, tile_hw), lambda bi: (bi, 0, 0)),      # x slab
            ],
            out_specs=pl.BlockSpec((1, c, tile_hw), lambda bi: (bi, 0, 0)),
            compiler_params=pltpu.CompilerParams(
                dimension_semantics=("parallel",),
                vmem_limit_bytes=vmem_limit),
            cost_estimate=cost,
        )(beta, x_flat)
    else:
        cost = pl.CostEstimate(
            flops=4 * b * c * c * hw,
            transcendentals=b * c * c,
            bytes_accessed=3 * b * c * hw * itemsize + 4 * b * c * c,
        )
        # Phase 0 walks tiles 0..nk-1; phase 1 walks them in reverse so its
        # first tile is already resident.  The output block is parked at tile
        # nk-1 during phase 0 (never written there, never flushed unwritten).
        x_map = lambda bi, p, k: (bi, 0, (1 - p) * k + p * (nk - 1 - k))
        o_map = lambda bi, p, k: (bi, 0, nk - 1 - p * k)
        out_flat = pl.pallas_call(
            functools.partial(_ca_two_phase_kernel, hw=hw, tile_hw=tile_hw),
            out_shape=jax.ShapeDtypeStruct((b, c, hw), x.dtype),
            grid=(b, 2, nk),
            in_specs=[
                pl.BlockSpec(memory_space=pltpu.MemorySpace.SMEM),        # beta
                pl.BlockSpec((1, c, tile_hw), x_map),                      # x tile
            ],
            out_specs=pl.BlockSpec((1, c, tile_hw), o_map),
            scratch_shapes=[
                pltpu.VMEM((c, c), jnp.float32),      # gram accumulator (f32)
                pltpu.VMEM((c, c), x.dtype),          # attn.T (MXU operand dtype)
            ],
            compiler_params=pltpu.CompilerParams(
                dimension_semantics=("parallel", "arbitrary", "arbitrary"),
                vmem_limit_bytes=vmem_limit),
            cost_estimate=cost,
        )(beta, x_flat)

    return out_flat.reshape(b, c, h, w)


def channel_attention_ref(x, beta):
    """Pure-JAX reference mirroring the PyTorch forward exactly."""
    b, c, h, w = x.shape
    xf = x.reshape(b, c, h * w).astype(jnp.float32)
    gram = jnp.einsum('bik,bjk->bij', xf, xf)
    attn = jax.nn.softmax(gram, axis=2)
    out = jnp.einsum('bki,bkj->bij', attn, xf)
    return (beta[0] * out + xf).reshape(b, c, h, w).astype(x.dtype)


if __name__ == "__main__":
    key = jax.random.PRNGKey(0)

    # Case 1: module-default init (beta = 0), lane-aligned HW -> single-phase
    # fast path (nk == 1).
    B, C, H, W = 2, 8, 16, 16
    x = jax.random.normal(key, (B, C, H, W), dtype=jnp.float32)
    beta0 = jnp.zeros((1,), dtype=jnp.float32)        # parameter init: fill_(0.0)
    y = channel_attention(x, beta0)
    jax.block_until_ready(y)
    assert jnp.allclose(y, channel_attention_ref(x, beta0), atol=1e-5, rtol=1e-5)

    # Case 2: non-zero beta exercises the attention path.
    beta1 = jnp.array([0.5], dtype=jnp.float32)
    y1 = channel_attention(x, beta1)
    jax.block_until_ready(y1)
    assert jnp.allclose(y1, channel_attention_ref(x, beta1), atol=1e-4, rtol=1e-4)

    # Case 3: forced multi-tile HW (HW = 512, tile = 128 -> 4-tile, two-phase,
    # reversed-order phase 1).
    key2 = jax.random.split(key, 2)[1]
    x2 = jax.random.normal(key2, (2, 4, 32, 16), dtype=jnp.float32)
    y2 = channel_attention(x2, beta1, tile_hw=128)
    jax.block_until_ready(y2)
    assert jnp.allclose(y2, channel_attention_ref(x2, beta1), atol=1e-4, rtol=1e-4)

    # Case 4: non-128-multiple HW (144) -> single-phase path with in-kernel
    # masking of the ragged block (no wrapper pad/slice).
    key3 = jax.random.split(key, 3)[2]
    x3 = jax.random.normal(key3, (1, 4, 12, 12), dtype=jnp.float32)
    y3 = channel_attention(x3, beta1)
    jax.block_until_ready(y3)
    assert jnp.allclose(y3, channel_attention_ref(x3, beta1), atol=1e-4, rtol=1e-4)

    # Case 5: multi-tile path with a ragged tail tile (HW = 400, tile = 128 ->
    # nk = 4, last tile only 16 valid columns, masked in the gram pass).
    key4 = jax.random.split(key, 4)[3]
    x4 = jax.random.normal(key4, (1, 8, 20, 20), dtype=jnp.float32)
    y4 = channel_attention(x4, beta1, tile_hw=128)
    jax.block_until_ready(y4)
    assert jnp.allclose(y4, channel_attention_ref(x4, beta1), atol=1e-4, rtol=1e-4)

    print("KERNEL_OK")
</pallas_src>

<mosaic_0001>
module attributes {stable_mosaic.version = 11 : i64} {
  func.func @_ca_single_kernel(%arg0: i32, %arg1: memref<1xf32, #tpu.memory_space<smem>>, %arg2: memref<1x8x256xf32, #tpu.memory_space<vmem>>, %arg3: memref<1x8x256xf32, #tpu.memory_space<vmem>>) attributes {dimension_semantics = [#tpu.dimension_semantics<parallel>], iteration_bounds = array<i64: 2>, scalar_prefetch = 0 : i64, scratch_operands = 0 : i64, tpu.core_type = #tpu.core_type<tc>, window_params = [{transform_indices = @transform_0, window_bounds = array<i64: 1>}, {transform_indices = @transform_1, window_bounds = array<i64: 1, 8, 256>}, {transform_indices = @transform_2, window_bounds = array<i64: 1, 8, 256>}]} {
    %c0 = arith.constant 0 : index
    %c0_0 = arith.constant 0 : index
    %c0_1 = arith.constant 0 : index
    %0 = vector.load %arg2[%c0, %c0_0, %c0_1] : memref<1x8x256xf32, #tpu.memory_space<vmem>>, vector<1x8x256xf32>
    %1 = vector.shape_cast %0 : vector<1x8x256xf32> to vector<8x256xf32>
    %cst = arith.constant dense<0.000000e+00> : vector<8x8xf32>
    %2 = tpu.matmul %1, %1, %cst {dimension_numbers = #tpu.dot_dimension_numbers<[1], [1], [0], [0], [0, 0, 1, 0], [], []>} : vector<8x256xf32>, vector<8x256xf32>, vector<8x8xf32> -> vector<8x8xf32>
    %cst_2 = arith.constant dense<0xFF800000> : vector<8xf32>
    %3 = vector.multi_reduction <maximumf>, %2, %cst_2 [0] : vector<8x8xf32> to vector<8xf32>
    %4 = vector.shape_cast %3 : vector<8xf32> to vector<1x8xf32>
    %5 = vector.broadcast %4 : vector<1x8xf32> to vector<8x8xf32>
    %6 = arith.subf %2, %5 : vector<8x8xf32>
    %7 = math.exp %6 : vector<8x8xf32>
    %cst_3 = arith.constant dense<0.000000e+00> : vector<8xf32>
    %8 = vector.multi_reduction <add>, %7, %cst_3 [0] : vector<8x8xf32> to vector<8xf32>
    %9 = vector.shape_cast %8 : vector<8xf32> to vector<1x8xf32>
    %10 = vector.broadcast %9 : vector<1x8xf32> to vector<8x8xf32>
    %11 = arith.divf %7, %10 : vector<8x8xf32>
    %cst_4 = arith.constant dense<0.000000e+00> : vector<8x256xf32>
    %12 = tpu.matmul %11, %1, %cst_4 {dimension_numbers = #tpu.dot_dimension_numbers<[1], [0], [0], [1], [0, 0, 1, 1], [], []>} : vector<8x8xf32>, vector<8x256xf32>, vector<8x256xf32> -> vector<8x256xf32>
    %c0_5 = arith.constant 0 : index
    %13 = memref.load %arg1[%c0_5] : memref<1xf32, #tpu.memory_space<smem>>
    %14 = vector.broadcast %13 : f32 to vector<8x256xf32>
    %15 = arith.mulf %14, %12 : vector<8x256xf32>
    %16 = arith.addf %15, %1 : vector<8x256xf32>
    %c0_6 = arith.constant 0 : index
    %c0_7 = arith.constant 0 : index
    %c0_8 = arith.constant 0 : index
    %17 = vector.load %arg3[%c0_6, %c0_7, %c0_8] : memref<1x8x256xf32, #tpu.memory_space<vmem>>, vector<1x8x256xf32>
    %18 = vector.shape_cast %17 : vector<1x8x256xf32> to vector<8x256xf32>
    %19 = vector.shape_cast %16 : vector<8x256xf32> to vector<1x8x256xf32>
    tpu.vector_store %arg3[%c0_6, %c0_7, %c0_8], %19 {strides = array<i32>} : memref<1x8x256xf32, #tpu.memory_space<vmem>>, vector<1x8x256xf32>,
    return
  }
  func.func @transform_0(%arg0: i32) -> i32 {
    %c0_i32 = arith.constant 0 : i32
    %c0_i32_0 = arith.constant 0 : i32
    return %c0_i32 : i32
  }
  func.func @transform_1(%arg0: i32) -> (i32, i32, i32) {
    %c0_i32 = arith.constant 0 : i32
    %c0_i32_0 = arith.constant 0 : i32
    %c0_i32_1 = arith.constant 0 : i32
    return %arg0, %c0_i32, %c0_i32_0 : i32, i32, i32
  }
  func.func @transform_2(%arg0: i32) -> (i32, i32, i32) {
    %c0_i32 = arith.constant 0 : i32
    %c0_i32_0 = arith.constant 0 : i32
    %c0_i32_1 = arith.constant 0 : i32
    return %arg0, %c0_i32, %c0_i32_0 : i32, i32, i32
  }
}

</mosaic_0001>

<bundles_post_ra>
// kernel: tpu_custom_call.1
= control target key start
LH: loop header
LB: loop body
LE: loop exit
PB: predicated region body
PF: predicated region fallthrough
CT: control target
= control target key end

     0   :  { %s751_s0 = inlined_call_operand.<no memory space> [shape: f32[1], index: 0, kind: input, shape index: {}]   ;;  %s752_s1 = inlined_call_operand.hbm [shape: f32[2,8,256], index: 1, kind: input, shape index: {}]   ;;  %s753_s2 = inlined_call_operand.hbm [shape: f32[2,8,256], index: 2, kind: output, shape index: {}]  }
   0x1   :  { %7 = sst [smem:[#allocation2]] %s751_s0 }
   0x2   :  { %8 = vsyncpa [#allocation4], 0 }
   0x3   :  { %10 = vsyncpa [#allocation4 + $0x1], 0 }
   0x4   :  { %11 = vsyncpa [#allocation5], 0 }
   0x5   :  { %13 = vsyncpa [#allocation5 + $0x1], 0  ;;  %s603_s11 = smov 0   ;;  %s605_s12 = smov 0  }
   0x6   :  { %s607_s13 = smov 0   ;;  %s609_s14 = smov 0  }
   0x7 LB: > { %s624_s0 = sadd.s32 4294967295, %s580_s14   ;;  %s420_s15 = sadd.s32 4294967294, %s580_s14   ;;  %s580_s14 = sphi %s609_s14, %s770_s14   ;;  %s576_s13 = sphi %s607_s13, %s769_s13   ;;  %s572_s12 = sphi %s605_s12, %s768_s12   ;;  %s568_s11 = sphi %s603_s11, %s767_s11  }
   0x8   : > { %s628_s16 = sadd.s32 1, %s580_s14   ;;  %s47_s17 = sadd.s32 1, %s576_s13 }
   0x9   : > { %s44_s18 = ssub.s32 %s580_s14, %s628_s16  ;;  %p54_p0 = scmp.ne.s32.totalorder %s576_s13, %s572_s12 }
   0xa   : > { %p45_p1 = scmp.eq.s32.totalorder %s44_s18, 0  ;;  %p55_p2 = scmp.eq.s32.totalorder %s580_s14, 0 }
   0xb   : > { %p60_p3 = scmp.ne.s32.totalorder %s572_s12, %s568_s11  ;;  %p61_p4 = scmp.eq.s32.totalorder %s624_s0, 0 }
   0xc   : > { %s640_s19 = scalar_select %p45_p1, %s576_s13, %s47_s17  }
   0xd   : > { %p642_p5 = por %p55_p2, %p54_p0  ;;  %p646_p6 = por %p61_p4, %p60_p3 }
   0xe   : > { %p84_p7 = scmp.eq.s32.totalorder %s624_s0, 1  ;;  %p90_p8 = scmp.eq.s32.totalorder %s420_s15, 1 }
   0xf   : > { %s757_s21 = scalar_select %p646_p6, 1, 0 }
  0x10   : > { %p449_p10 = scmp.lt.s32.totalorder %s580_s14, 2  ;;  %p653_p11 = por %p84_p7, %p54_p0 }
  0x11   : > { %p657_p12 = por %p90_p8, %p60_p3  ;;  %s113_s24 = sand.u32 1, %s576_s13  }
  0x12   : > { %s758_s22 = scalar_select %p653_p11, 1, 0 }
  0x13   : > { %s759_s23 = scalar_select %p657_p12, 1, 0 }
  0x14   : > { %s435_s25 = sshll.u32 %s580_s14, 8  ;;  %s423_s26 = sshll.u32 %s113_s24, 4 }
  0x15   : > { %s666_s29 = scalar_lea.hbm %s752_s1, %s435_s25  ;;  %s117_s30 = scalar_lea.vmem [#allocation3], %s423_s26 }
  0x16   : > { %s125_s3 = sshll.u32 %s117_s30, 4  ;;  %p670_p13 = pnand %p449_p10, %p642_p5  ;;  %s674_s3 = int_to_ptr.vmem [resolvable:$true] %s125_s3 }
  0x17   : > { %s114_s5 = scalar_lea.sflag [#allocation4], %s113_s24  ;;  %s488_s6 = scalar_lea.hbm %s666_s29, 256 }
  0x18   : > { %p489_p2 = scmp.ne.s32.totalorder %s666_s29, %s488_s6  ;;  %p490_p3 = pneg %p670_p13 }
  0x19   : > { %s493_s9 = scalar_lea.hbm %s752_s1, 512  ;;  %p494_p5 = scmp.lt.s32.totalorder %s666_s29, %s752_s1 }
  0x1a   : > { %p491_p4 = pnand %p490_p3, %p489_p2  ;;  %p495_p8 = scmp.lt.s32.totalorder %s493_s9, %s488_s6 }
  0x1c   : > { %p492_p7 = pneg %p491_p4  ;;  %p496_p10 = por %p495_p8, %p494_p5 }
  0x1e   : > { %p497_p9 = pnand %p496_p10, %p492_p7 }
  0x20   : > { %500 = shalt.err (!%p497_p9)
}
  0x21   : > { %s501_s17 = scalar_lea.vmem %s674_s3, 256  ;;  %s582_s18 = smov [#allocation3]  }
  0x22   : > { %p502_p0 = scmp.ne.s32.totalorder %s674_s3, %s501_s17  ;;  %s506_s20 = sshll.u32 %s582_s18, 4  ;;  %s507_s20 = int_to_ptr.vmem [resolvable:$false] %s506_s20 }
  0x23   : > { %s508_s24 = scalar_lea.vmem %s507_s20, 512  ;;  %p509_p4 = scmp.lt.s32.totalorder %s674_s3, %s507_s20 }
  0x24   : > { %p504_p1 = pnand %p502_p0, %p490_p3  ;;  %p510_p12 = scmp.lt.s32.totalorder %s508_s24, %s501_s17 }
  0x26   : > { %p505_p2 = pneg %p504_p1  ;;  %p511_p11 = por %p510_p12, %p509_p4 }
  0x28   : > { %p512_p6 = pnand %p511_p11, %p505_p2 }
  0x2a   : > { %515 = shalt.err (!%p512_p6)
}
  0x2b   : > { %444 = dma.hbm_to_vmem [thread:$0]  (!%p670_p13), %s666_s29, 256, %s674_s3, %s114_s5  }
  0x2c   : > { %p761_p9 = scmp.lt.s32.totalorder %s580_s14, 3  ;;  %p762_p7 = scmp.ge.s32.totalorder %s580_s14, 1 }
  0x2e   : > { %p131_p0 = pnand %p762_p7, %p761_p9 }
  0x2f   : > { %s701_s25 = sand.u32 (!%p131_p0), 1, %s572_s12   ;;  %p763_p6 = scmp.ne.s32.totalorder (!%p131_p0), %s757_s21, 0 }
  0x30   : > { %134 = sbr.rel (%p131_p0) target bundleno = 524 (0x20c), region = 28  ;;  %s427_s26 = sshll.u32 (!%p131_p0), %s701_s25, 4 }
  0x31   : > { %s137_s27 = scalar_lea.sflag (!%p131_p0), [#allocation4], %s701_s25  ;;  %s140_s28 = scalar_lea.vmem (!%p131_p0), [#allocation3], %s427_s26 }
  0x35   : > { %559 = dma.done.wait (%p763_p6), %s137_s27, 256  }
  0x36   : > { %561 = vsyncadd (%p763_p6), %s137_s27, 4294967040  ;;  %v162_v0 = vld [vmem:[%s140_s28 + $0x8] sm:$0xff]  ;;  %v161_v1 = vld [vmem:[%s140_s28] sm:$0xff]  ;;  %v583_v2 = vmov 0.0   ;;  %vm233_vm0 = vcmask 64512   ;;  %s327_s21 = sld [smem:[#allocation2]] }
  0x37   : > { %193 = vmatprep.subr.mxu0 %v162_v0  ;;  %227 = vmatprep.mubr.f32.mxu0 %v162_v0  ;;  %s436_s29 = sshll.u32 %s624_s0, 8  ;;  %s160_s30 = scalar_lea.vmem [#allocation6], %s427_s26 }
  0x38   : > { %194 = vmatpush1.xpose.msra.mxu0 %v161_v1  ;;  %286 = vmatprep.subr.mxu1 %v162_v0  ;;  %s350_s3 = sshll.u32 %s160_s30, 4  ;;  %s348_s6 = scalar_lea.hbm %s753_s2, %s436_s29  ;;  %s351_s3 = int_to_ptr.vmem [resolvable:$true] %s350_s3 }
  0x39   : > { %287 = vmatpush1.msra.mxu1 %v161_v1  ;;  %320 = vmatprep.mubr.f32.mxu1 %v583_v2  ;;  %s336_s7 = scalar_lea.sflag [#allocation5], %s701_s25  ;;  %s516_s8 = scalar_lea.vmem %s351_s3, 256 }
  0x3a   : > { %p517_p11 = scmp.ne.s32.totalorder %s351_s3, %s516_s8  ;;  %p764_p12 = scmp.ne.s32.totalorder %s758_s22, 0 }
  0x3b   : > { %228 = vmatmul.mubr.f32.vlgmr.msra.gmra.mxu0 %v161_v1  ;;  %s584_s0 = smov [#allocation6]  }
  0x3c   : > { %v328_v24 = vstv %s327_s21  ;;  %p518_p13 = pnand %p517_p11, %p764_p12  ;;  %s520_s9 = sshll.u32 %s584_s0, 4  ;;  %s521_s9 = int_to_ptr.vmem [resolvable:$false] %s520_s9 }
  0x3d   : > { %s522_s10 = scalar_lea.vmem %s521_s9, 512  ;;  %p523_p3 = scmp.lt.s32.totalorder %s351_s3, %s521_s9 }
  0x3e   : > { %p519_p1 = pneg %p518_p13  ;;  %p524_p5 = scmp.lt.s32.totalorder %s522_s10, %s516_s8 }
  0x40   : > { %p525_p8 = por %p524_p5, %p523_p3 }
  0x42   : > { %p526_p10 = pnand %p525_p8, %p519_p1 }
  0xfb   : > { %v229_v3 = vpop.f32.mrf.mxu0 }
  0xfc   : > { %v234_v4 = vsel %vm233_vm0, %v229_v3, -inf }
  0xfd   : > { %v235_v5 = vrot.slane %v234_v4, 4  ;;  %v231_v6 = vpop.f32.mrf.mxu0 }
  0xff   : > { %v236_v7 = vmax.f32 %v234_v4, %v235_v5 }
 0x101   : > { %v237_v8 = vrot.slane %v236_v7, 2 }
 0x103   : > { %v238_v9 = vmax.f32 %v236_v7, %v237_v8 }
 0x105   : > { %v239_v10 = vrot.slane %v238_v9, 1 }
 0x107   : > { %v240_v11 = vmax.f32 %v238_v9, %v239_v10 }
 0x109   : > { %v241_v12 = vsub.f32 %v229_v3, %v240_v11 }
 0x10b   : > { %v242_v13 = vmul.f32 1.442695, %v241_v12 }
 0x10d   : > { %484 = vpow2.f32 %v242_v13 }
 0x11a   : > { %v485_v14 = vpop.eup %484 }
 0x11b   : > { %v244_v15 = vsel %vm233_vm0, %v485_v14, 0.0 }
 0x11c   : > { %v245_v16 = vrot.slane %v244_v15, 4 }
 0x11e   : > { %v246_v17 = vadd.f32 %v245_v16, %v244_v15 }
 0x120   : > { %v247_v18 = vrot.slane %v246_v17, 2 }
 0x122   : > { %v248_v19 = vadd.f32 %v247_v18, %v246_v17 }
 0x124   : > { %v249_v20 = vrot.slane %v248_v19, 1 }
 0x126   : > { %v250_v21 = vadd.f32 %v249_v20, %v248_v19 }
 0x128   : > { %486 = vrcp.f32 %v250_v21 }
 0x135   : > { %v487_v22 = vpop.eup %486 }
 0x136   : > { %v252_v23 = vmul.f32 %v487_v22, %v485_v14 }
 0x138   : > { %429 = vmatmul.mubr.msk.f32.vlgmr.msra.gmra.mxu1 %vm233_vm0, %v252_v23 }
 0x1f8   : > { %v322_v25 = vpop.f32.mrf.mxu1 }
 0x1f9   : > { %v329_v26 = vmul.f32 %v328_v24, %v322_v25 }
 0x1fa   : > { %v324_v27 = vpop.f32.mrf.mxu1 }
 0x1fb   : > { %v331_v28 = vadd.f32 %v329_v26, %v161_v1  ;;  %v330_v29 = vmul.f32 %v328_v24, %v324_v27 }
 0x1fd   : > { %333 = vst [vmem:[%s160_s30] sm:$0xff] %v331_v28  ;;  %v332_v30 = vadd.f32 %v330_v29, %v162_v0 }
 0x1ff   : > { %334 = vst [vmem:[%s160_s30 + $0x8] sm:$0xff] %v332_v30 }
 0x200   : > { %529 = shalt.err (!%p526_p10)
}
 0x201   : > { %s530_s15 = scalar_lea.hbm %s348_s6, 256  ;;  %s534_s20 = scalar_lea.hbm %s753_s2, 512 }
 0x202   : > { %p531_p2 = scmp.ne.s32.totalorder %s348_s6, %s530_s15  ;;  %p535_p7 = scmp.lt.s32.totalorder %s348_s6, %s753_s2 }
 0x203   : > { %p536_p0 = scmp.lt.s32.totalorder %s534_s20, %s530_s15 }
 0x204   : > { %p532_p4 = pnand %p531_p2, %p764_p12 }
 0x205   : > { %p537_p6 = por %p536_p0, %p535_p7 }
 0x206   : > { %p533_p9 = pneg %p532_p4 }
 0x208   : > { %p538_p11 = pnand %p537_p6, %p533_p9 }
 0x20a   : > { %541 = shalt.err (!%p538_p11)
}
 0x20b   : > { %439 = dma.vmem_to_hbm [thread:$0]  (%p764_p12), %s351_s3, 256, %s348_s6, %s336_s7  }
 0x20c PF: > { %s362_s26 = sand.u32 1, %s568_s11   ;;  %p765_p13 = scmp.ne.s32.totalorder %s759_s23, 0 }
 0x20d   : > { %p766_p1 = scmp.ge.s32.totalorder %s580_s14, 2  ;;  %s363_s27 = scalar_lea.sflag [#allocation5], %s362_s26 }
 0x20f   : > { %p446_p3 = pnand %p766_p1, %p765_p13 }
 0x211   : > { %p447_p5 = pneg %p446_p3 }
 0x213   : > { %563 = dma.done.wait (%p447_p5), %s363_s27, 256  }
 0x214   : > { %565 = vsyncadd (%p447_p5), %s363_s27, 4294967040  ;;  %p16_p8 = scmp.ge.s32.totalorder %s628_s16, 4   ;;  %s767_s11 = smov %s572_s12 }
 0x215   : > { %s768_s12 = smov %s576_s13  ;;  %s769_s13 = smov %s640_s19 }
 0x216   : > { %s770_s14 = smov %s628_s16  ;;  %18 = sbr.rel (!%p16_p8) target bundleno = 7 (0x7), region = 73 }
 0x21b   :  { %368 = vsyncpa [#allocation4], 1 }
 0x21c   :  { %370 = vsyncpa [#allocation4 + $0x1], 1 }
 0x21d   :  { %371 = vsyncpa [#allocation5], 1 }
 0x21e   :  { %373 = vsyncpa [#allocation5 + $0x1], 1 }

</bundles_post_ra>
